<compile_context>
chip_gen: v7x
topology: tpu7x:2x2x1
jax: 0.10.0
libtpu: 0.0.40
codegen_flags: <defaults>
</compile_context>

<pallas_src>
import math

import jax
import jax.numpy as jnp
from jax.experimental import pallas as pl
from jax.experimental.pallas import tpu as pltpu

D_IN = 784        # 1 * 28 * 28 after nn.Flatten()
D_OUT = 10
D_OUT_PAD = 128   # lane-dense weight / accumulator width (multiple of 128)
TB_MAX = 512      # batch-tile rows (review: 512-1024 ~ 85% of HBM roofline)


# ----------------------------- Pallas kernel ------------------------------ #
def _lowest_kernel(x_ref, w_ref, b_ref, o_ref):
    # nn.ReLU() on the batch tile (VPU), then nn.Linear as one MXU matmul.
    h = jnp.maximum(x_ref[...], 0)                                  # bf16 ReLU
    acc = jnp.dot(h, w_ref[...],
                  preferred_element_type=jnp.float32)               # (TB,128) f32
    acc = acc + b_ref[...].astype(jnp.float32)                      # bias add
    # Store only the 10 real columns back to HBM (no padded-output round-trip).
    o_ref[...] = acc[:, :D_OUT].astype(o_ref.dtype)


# --------------------------------- wrapper --------------------------------- #
def lowest_forward(x, w_pad, b_pad):
    """Flatten -> ReLU -> Linear(784, 10).

    x     : (B, 1, 28, 28) or (B, 784), bf16 (cast once upstream, not here)
    w_pad : (784, 128) bf16 -- pre-transposed, out-dim zero-padded 10 -> 128
    b_pad : (1, 128)   bf16 -- zero-padded bias
    returns (B, 10) f32
    """
    B = x.shape[0]
    x2d = x.reshape(B, -1)                       # nn.Flatten(): free row-major reshape

    tb = B if B < TB_MAX else TB_MAX             # small B -> one full-array step
    grid = (pl.cdiv(B, tb),)

    bytes_accessed = (x2d.size * x2d.dtype.itemsize
                      + w_pad.size * w_pad.dtype.itemsize
                      + b_pad.size * b_pad.dtype.itemsize
                      + B * D_OUT * 4)

    return pl.pallas_call(
        _lowest_kernel,
        out_shape=jax.ShapeDtypeStruct((B, D_OUT), jnp.float32),
        grid=grid,
        in_specs=[
            pl.BlockSpec((tb, D_IN), lambda i: (i, 0)),          # streamed x tiles
            pl.BlockSpec((D_IN, D_OUT_PAD), lambda i: (0, 0)),   # VMEM-resident weight
            pl.BlockSpec((1, D_OUT_PAD), lambda i: (0, 0)),      # VMEM-resident bias
        ],
        out_specs=pl.BlockSpec((tb, D_OUT), lambda i: (i, 0)),
        compiler_params=pltpu.CompilerParams(
            dimension_semantics=("parallel",),   # v7x: shard batch tiles over 2 TCs
        ),
        cost_estimate=pl.CostEstimate(
            flops=2 * B * D_IN * D_OUT_PAD,
            bytes_accessed=bytes_accessed,
            transcendentals=0,
        ),
    )(x2d, w_pad, b_pad)


# ------------------------- one-time parameter prep ------------------------- #
def init_lowest_params(key):
    """torch.nn.Linear(784, 10)-style init; one-time transpose / pad / bf16 cast."""
    kw, kb = jax.random.split(key)
    bound = 1.0 / math.sqrt(D_IN)
    w = jax.random.uniform(kw, (D_OUT, D_IN), jnp.float32, -bound, bound)  # torch (out, in)
    b = jax.random.uniform(kb, (D_OUT,), jnp.float32, -bound, bound)
    # One-time layout + dtype work (NOT in the per-forward hot path):
    # transpose to (in, out), zero-pad out-dim 10 -> 128, cast to bf16.
    w_pad = (jnp.zeros((D_IN, D_OUT_PAD), jnp.float32)
             .at[:, :D_OUT].set(w.T).astype(jnp.bfloat16))
    b_pad = (jnp.zeros((1, D_OUT_PAD), jnp.float32)
             .at[:, :D_OUT].set(b).astype(jnp.bfloat16))
    return w, b, w_pad, b_pad


def _reference(x_bf16, w_pad, b_pad):
    """Pure-JAX reference using the same bf16-rounded parameters / input."""
    xf = x_bf16.reshape(x_bf16.shape[0], -1).astype(jnp.float32)
    wf = w_pad[:, :D_OUT].astype(jnp.float32)
    bf = b_pad[0, :D_OUT].astype(jnp.float32)
    return jnp.dot(jnp.maximum(xf, 0.0), wf,
                   precision=jax.lax.Precision.HIGHEST) + bf


# --------------------------------- main ------------------------------------ #
if __name__ == "__main__":
    key = jax.random.PRNGKey(0)
    k_x, k_p, k_x2 = jax.random.split(key, 3)
    w, b, w_pad, b_pad = init_lowest_params(k_p)

    fwd = jax.jit(lowest_forward)

    # Small-batch check (single grid step, full-array blocks).
    B = 2
    x = jax.random.normal(k_x, (B, 1, 28, 28), jnp.float32).astype(jnp.bfloat16)
    out = jax.block_until_ready(fwd(x, w_pad, b_pad))
    ref = _reference(x, w_pad, b_pad)
    assert out.shape == (B, D_OUT)
    assert jnp.allclose(out, ref, atol=1e-3, rtol=1e-3)

    # Tiled-grid check: 3 batch tiles of 512 rows, last one partial.
    B2 = 1040
    x2 = jax.random.normal(k_x2, (B2, 1, 28, 28), jnp.float32).astype(jnp.bfloat16)
    out2 = jax.block_until_ready(fwd(x2, w_pad, b_pad))
    ref2 = _reference(x2, w_pad, b_pad)
    assert out2.shape == (B2, D_OUT)
    assert jnp.allclose(out2, ref2, atol=1e-3, rtol=1e-3)

    print("KERNEL_OK")
</pallas_src>

<mosaic_0001>
module attributes {stable_mosaic.version = 11 : i64} {
  func.func @_lowest_kernel(%arg0: i32, %arg1: memref<2x784xbf16, #tpu.memory_space<vmem>>, %arg2: memref<784x128xbf16, #tpu.memory_space<vmem>>, %arg3: memref<1x128xbf16, #tpu.memory_space<vmem>>, %arg4: memref<2x10xf32, #tpu.memory_space<vmem>>) attributes {dimension_semantics = [#tpu.dimension_semantics<parallel>], iteration_bounds = array<i64: 1>, scalar_prefetch = 0 : i64, scratch_operands = 0 : i64, tpu.core_type = #tpu.core_type<tc>, window_params = [{transform_indices = @transform_0, window_bounds = array<i64: 2, 784>}, {pipeline_mode = #tpu.pipeline_mode<synchronous>, transform_indices = @transform_1, window_bounds = array<i64: 784, 128>}, {pipeline_mode = #tpu.pipeline_mode<synchronous>, transform_indices = @transform_2, window_bounds = array<i64: 1, 128>}, {transform_indices = @transform_3, window_bounds = array<i64: 2, 10>}]} {
    %c0 = arith.constant 0 : index
    %c0_0 = arith.constant 0 : index
    %0 = vector.load %arg1[%c0, %c0_0] : memref<2x784xbf16, #tpu.memory_space<vmem>>, vector<2x784xbf16>
    %cst = arith.constant 0.000000e+00 : bf16
    %1 = vector.broadcast %cst : bf16 to vector<2x784xbf16>
    %2 = arith.maximumf %0, %1 : vector<2x784xbf16>
    %c0_1 = arith.constant 0 : index
    %c0_2 = arith.constant 0 : index
    %3 = vector.load %arg2[%c0_1, %c0_2] : memref<784x128xbf16, #tpu.memory_space<vmem>>, vector<784x128xbf16>
    %cst_3 = arith.constant dense<0.000000e+00> : vector<2x128xf32>
    %4 = tpu.matmul %2, %3, %cst_3 {dimension_numbers = #tpu.dot_dimension_numbers<[1], [0], [0], [1], [0, 0, 1, 1], [], []>} : vector<2x784xbf16>, vector<784x128xbf16>, vector<2x128xf32> -> vector<2x128xf32>
    %c0_4 = arith.constant 0 : index
    %c0_5 = arith.constant 0 : index
    %5 = vector.load %arg3[%c0_4, %c0_5] : memref<1x128xbf16, #tpu.memory_space<vmem>>, vector<1x128xbf16>
    %6 = arith.extf %5 : vector<1x128xbf16> to vector<1x128xf32>
    %7 = vector.broadcast %6 : vector<1x128xf32> to vector<2x128xf32>
    %8 = arith.addf %4, %7 : vector<2x128xf32>
    %9 = vector.extract_strided_slice %8 {offsets = [0, 0], sizes = [2, 10], strides = [1, 1]} : vector<2x128xf32> to vector<2x10xf32>
    %c0_6 = arith.constant 0 : index
    %c0_7 = arith.constant 0 : index
    %10 = vector.load %arg4[%c0_6, %c0_7] : memref<2x10xf32, #tpu.memory_space<vmem>>, vector<2x10xf32>
    tpu.vector_store %arg4[%c0_6, %c0_7], %9 {strides = array<i32>} : memref<2x10xf32, #tpu.memory_space<vmem>>, vector<2x10xf32>,
    return
  }
  func.func @transform_0(%arg0: i32) -> (i32, i32) {
    %c0_i32 = arith.constant 0 : i32
    %c0_i32_0 = arith.constant 0 : i32
    return %arg0, %c0_i32 : i32, i32
  }
  func.func @transform_1(%arg0: i32) -> (i32, i32) {
    %c0_i32 = arith.constant 0 : i32
    %c0_i32_0 = arith.constant 0 : i32
    %c0_i32_1 = arith.constant 0 : i32
    return %c0_i32, %c0_i32_0 : i32, i32
  }
  func.func @transform_2(%arg0: i32) -> (i32, i32) {
    %c0_i32 = arith.constant 0 : i32
    %c0_i32_0 = arith.constant 0 : i32
    %c0_i32_1 = arith.constant 0 : i32
    return %c0_i32, %c0_i32_0 : i32, i32
  }
  func.func @transform_3(%arg0: i32) -> (i32, i32) {
    %c0_i32 = arith.constant 0 : i32
    %c0_i32_0 = arith.constant 0 : i32
    return %arg0, %c0_i32 : i32, i32
  }
}

</mosaic_0001>

<bundles_post_ra>
// kernel: lowest_forward.1
= control target key start
LH: loop header
LB: loop body
LE: loop exit
PB: predicated region body
PF: predicated region fallthrough
CT: control target
= control target key end

     0   :  { %8 = vsyncpa [#allocation3], 0  ;;  %s957_s0 = inlined_call_operand.vmem [shape: bf16[2,784], index: 0, kind: input, shape index: {}]   ;;  %s958_s1 = inlined_call_operand.hbm [shape: bf16[784,128], index: 1, kind: input, shape index: {}]   ;;  %s959_s2 = inlined_call_operand.vmem [shape: bf16[1,128], index: 2, kind: input, shape index: {}]   ;;  %s960_s3 = inlined_call_operand.hbm [shape: f32[2,10], index: 3, kind: output, shape index: {}]  }
   0x1   :  { %9 = vsyncpa [#allocation4], 0  ;;  %s895_s12 = smov [#allocation2]   ;;  %s847_s16 = scalar_lea.hbm %s958_s1, 6272 }
   0x2   :  { %s17_s13 = sshll.u32 %s895_s12, 4  ;;  %p848_p0 = scmp.ne.s32.totalorder %s958_s1, %s847_s16  ;;  %s18_s13 = int_to_ptr.vmem [resolvable:$true] %s17_s13 }
   0x3   :  { %p851_p1 = scmp.lt.u32.totalorder %s847_s16, %s958_s1 }
   0x5   :  { %p853_p2 = pnand %p851_p1, %p848_p0 }
   0x7   :  { %856 = shalt.err (!%p853_p2)
}
   0x8   :  { %s857_s21 = scalar_lea.vmem %s18_s13, 6272  ;;  %p862_p4 = scmp.lt.s32.totalorder %s18_s13, %s18_s13 }
   0x9   :  { %p858_p3 = scmp.ne.s32.totalorder %s18_s13, %s857_s21  ;;  %p863_p5 = scmp.lt.s32.totalorder %s857_s21, %s857_s21 }
   0xb   :  { %p864_p6 = por %p863_p5, %p862_p4 }
   0xd   :  { %p865_p7 = pnand %p864_p6, %p858_p3 }
   0xf   :  { %868 = shalt.err (!%p865_p7)
}
  0x10   :  { %s896_s22 = smov 64   ;;  %s897_s23 = smov 4  }
  0x11   :  { %23 = dma.hbm_to_vmem [thread:$0]  %s958_s1, 6272, %s18_s13, [#allocation3], %s896_s22, %s896_s22, %s897_s23  }
  0x12   :  { %891 = dma.done.wait [#allocation3], 6272  }
  0x13   :  { %892 = vsyncadd [#allocation3], 4294961024  ;;  %v798_v0 = vld [vmem:[#allocation2 + $0x40] sm:$0xff]   ;;  %v802_v4 = vld [vmem:[#allocation2 + $0x48] sm:$0xff]   ;;  %v132_v23 = vlaneseq  ;;  %v898_v24 = vmov 1966171168  }
  0x14   :  { %v799_v1 = vld [vmem:[#allocation2] sm:$0xff]   ;;  %716 = vmatprep.subr.bf16.mxu0 %v798_v0  ;;  %v803_v5 = vld [vmem:[#allocation2 + $0x8] sm:$0xff]   ;;  %v806_v8 = vld [vmem:[#allocation2 + $0x50] sm:$0xff]   ;;  %v139_v25 = vunpack.c.l.s4 %v898_v24  ;;  %v899_v38 = vmov 0   ;;  %v900_v44 = vmov 0.0   ;;  %vm901_vm0 = vmmov 0  }
  0x15   :  { %v800_v2 = vld [vmem:[#allocation2 + $0xc0] sm:$0xff]   ;;  %717 = vmatpush3.bf16.msra.mxu0 %v799_v1  ;;  %v804_v6 = vld [vmem:[#allocation2 + $0xc8] sm:$0xff]   ;;  %v807_v9 = vld [vmem:[#allocation2 + $0x10] sm:$0xff]   ;;  %v935_v30 = vshrl.u32 %v132_v23, 7  ;;  %vm485_vm1 = vcmask 130048   ;;  %vm649_vm2 = vcmask 74752  }
  0x16   :  { %v801_v3 = vld [vmem:[#allocation2 + $0x80] sm:$0xff]   ;;  %738 = vmatprep.subr.bf16.mxu1 %v800_v2  ;;  %718 = vmatprep.subr.bf16.mxu0 %v802_v4  ;;  %v805_v7 = vld [vmem:[#allocation2 + $0x88] sm:$0xff]   ;;  %v808_v10 = vld [vmem:[#allocation2 + $0xd0] sm:$0xff]   ;;  %v140_v31 = vunpack.c.0.s8 %v139_v25 }
  0x17   :  { %739 = vmatpush3.bf16.msra.mxu1 %v801_v3  ;;  %v809_v11 = vld [vmem:[#allocation2 + $0x90] sm:$0xff]   ;;  %v810_v12 = vld [vmem:[#allocation2 + $0x58] sm:$0xff]   ;;  %v814_v16 = vld [vmem:[#allocation2 + $0x60] sm:$0xff]  }
  0x18   :  { %740 = vmatprep.subr.bf16.mxu1 %v804_v6  ;;  %v811_v13 = vld [vmem:[#allocation2 + $0x18] sm:$0xff]   ;;  %v815_v17 = vld [vmem:[#allocation2 + $0x20] sm:$0xff]   ;;  %v818_v20 = vld [vmem:[#allocation2 + $0x68] sm:$0xff]   ;;  %v143_v36 = vsub.s32 %v140_v31, %v935_v30 }
  0x19   :  { %719 = vmatpush3.bf16.msra.mxu0 %v803_v5  ;;  %v812_v14 = vld [vmem:[#allocation2 + $0xd8] sm:$0xff]   ;;  %v816_v18 = vld [vmem:[#allocation2 + $0xe0] sm:$0xff]   ;;  %v819_v21 = vld [vmem:[#allocation2 + $0x28] sm:$0xff]  }
  0x1a   :  { %720 = vmatprep.subr.bf16.mxu0 %v806_v8  ;;  %v813_v15 = vld [vmem:[#allocation2 + $0x98] sm:$0xff]   ;;  %v817_v19 = vld [vmem:[#allocation2 + $0xa0] sm:$0xff]   ;;  %v820_v22 = vld [vmem:[#allocation2 + $0xe8] sm:$0xff]  }
  0x1b   :  { %741 = vmatpush3.bf16.msra.mxu1 %v805_v7  ;;  %v821_v26 = vld [vmem:[#allocation2 + $0xa8] sm:$0xff]   ;;  %v822_v27 = vld [vmem:[#allocation2 + $0x70] sm:$0xff]   ;;  %v826_v33 = vld [vmem:[#allocation2 + $0x78] sm:$0xff]  }
  0x1c   :  { %742 = vmatprep.subr.bf16.mxu1 %v808_v10  ;;  %v823_v28 = vld [vmem:[#allocation2 + $0x30] sm:$0xff]   ;;  %v827_v34 = vld [vmem:[#allocation2 + $0x38] sm:$0xff]   ;;  %v30_v37 = vld [vmem:[%s957_s0] sm:$0x7f] }
  0x1d   :  { %721 = vmatpush3.bf16.msra.mxu0 %v807_v9  ;;  %v824_v29 = vld [vmem:[#allocation2 + $0xf0] sm:$0xff]   ;;  %v828_v35 = vld [vmem:[#allocation2 + $0xf8] sm:$0xff]   ;;  %v31_v39 = vmax.bf16 %v899_v38, %v30_v37  ;;  %v830_v41 = vld [vmem:[#allocation2 + $0x140] sm:$0xff]   ;;  %v134_v9 = vsub.s32 0, %v935_v30 }
  0x1e   :  { %722 = vmatprep.subr.bf16.mxu0 %v810_v12  ;;  %v825_v32 = vld [vmem:[#allocation2 + $0xb0] sm:$0xff]   ;;  %v829_v40 = vld [vmem:[#allocation2 + $0xb8] sm:$0xff]   ;;  %v831_v49 = vld [vmem:[#allocation2 + $0x100] sm:$0xff]  }
  0x1f   :  { %743 = vmatpush3.bf16.msra.mxu1 %v809_v11  ;;  %v137_v42 = vcombine.high %v31_v39, %v31_v39  ;;  %v144_v43 = vrot.slane %v31_v39, %v143_v36  ;;  %v832_v52 = vld [vmem:[#allocation2 + $0x148] sm:$0xff]   ;;  %v834_v56 = vld [vmem:[#allocation2 + $0x150] sm:$0xff]   ;;  %v836_v59 = vld [vmem:[#allocation2 + $0x158] sm:$0xff]  }
  0x20   :  { %744 = vmatprep.subr.bf16.mxu1 %v812_v14  ;;  %v833_v55 = vld [vmem:[#allocation2 + $0x108] sm:$0xff]   ;;  %v835_v57 = vld [vmem:[#allocation2 + $0x110] sm:$0xff]   ;;  %v846_v60 = vld [vmem:[#allocation2 + $0x180] sm:$0xff]  }
  0x21   :  { %723 = vmatpush3.bf16.msra.mxu0 %v811_v13  ;;  %v152_v45 = vcombine.high %v144_v43, %v144_v43  ;;  %v160_v46 = vrot.slane %v144_v43, %v143_v36  ;;  %v151_v47 = vrot.slane %v137_v42, %v143_v36  ;;  %v837_v61 = vld [vmem:[#allocation2 + $0x118] sm:$0xff]   ;;  %v838_v63 = vld [vmem:[#allocation2 + $0x160] sm:$0xff]   ;;  %v840_v1 = vld [vmem:[#allocation2 + $0x168] sm:$0xff]  }
  0x22   :  { %724 = vmatprep.subr.bf16.mxu0 %v814_v16  ;;  %v839_v0 = vld [vmem:[#allocation2 + $0x120] sm:$0xff]   ;;  %v841_v2 = vld [vmem:[#allocation2 + $0x128] sm:$0xff]   ;;  %v842_v3 = vld [vmem:[#allocation2 + $0x170] sm:$0xff]  }
  0x23   :  { %745 = vmatpush3.bf16.msra.mxu1 %v813_v15  ;;  %v174_v48 = vrot.slane %v152_v45, %v143_v36  ;;  %v153_v50 = vcombine.high %v151_v47, %v151_v47  ;;  %v182_v51 = vcombine.high %v160_v46, %v160_v46  ;;  %v167_v58 = vrot.slane %v151_v47, %v143_v36  ;;  %v843_v4 = vld [vmem:[#allocation2 + $0x130] sm:$0xff]   ;;  %v844_v5 = vld [vmem:[#allocation2 + $0x178] sm:$0xff]   ;;  %v130_v7 = vld [vmem:[%s959_s2] sm:$0x1]  ;;  %s902_s2 = smov [#allocation5]  }
  0x24   :  { %746 = vmatprep.subr.bf16.mxu1 %v816_v18  ;;  %v845_v6 = vld [vmem:[#allocation2 + $0x138] sm:$0xff]   ;;  %v131_v8 = vunpack.c.l.bf16 %v130_v7  ;;  %s657_s28 = sshll.u32 %s902_s2, 4  ;;  %s658_s28 = int_to_ptr.vmem [resolvable:$true] %s657_s28 }
  0x25   :  { %725 = vmatpush3.bf16.msra.mxu0 %v815_v17  ;;  %521 = vmatprep.mubr.bf16.mxu0 %v174_v48  ;;  %v184_v53 = vcombine.high %v174_v48, %v174_v48  ;;  %v181_v54 = vrot.slane %v153_v50, %v143_v36  ;;  %v183_v62 = vcombine.high %v167_v58, %v167_v58  ;;  %s869_s29 = scalar_lea.vmem %s658_s28, 32  ;;  %p874_p9 = scmp.lt.s32.totalorder %s658_s28, %s658_s28 }
  0x26   :  { %726 = vmatprep.subr.bf16.mxu0 %v818_v20  ;;  %v135_v11 = vrot.slane %v131_v8, %v134_v9  ;;  %p870_p8 = scmp.ne.s32.totalorder %s658_s28, %s869_s29  ;;  %p875_p10 = scmp.lt.s32.totalorder %s869_s29, %s869_s29 }
  0x27   :  { %747 = vmatpush3.bf16.msra.mxu1 %v817_v19  ;;  %561 = vmatprep.mubr.bf16.mxu1 %v184_v53 }
  0x28   :  { %748 = vmatprep.subr.bf16.mxu1 %v820_v22  ;;  %p876_p11 = por %p875_p10, %p874_p9 }
  0x29   :  { %727 = vmatpush3.bf16.msra.mxu0 %v819_v21 }
  0x2a   :  { %728 = vmatprep.subr.bf16.mxu0 %v822_v27  ;;  %p877_p12 = pnand %p876_p11, %p870_p8 }
  0x2b   :  { %749 = vmatpush3.bf16.msra.mxu1 %v821_v26 }
  0x2c   :  { %750 = vmatprep.subr.bf16.mxu1 %v824_v29 }
  0x2d   :  { %729 = vmatpush3.bf16.msra.mxu0 %v823_v28 }
  0x2e   :  { %730 = vmatprep.subr.bf16.mxu0 %v826_v33 }
  0x2f   :  { %751 = vmatpush3.bf16.msra.mxu1 %v825_v32 }
  0x30   :  { %752 = vmatprep.subr.bf16.mxu1 %v828_v35 }
  0x31   :  { %731 = vmatpush3.bf16.msra.mxu0 %v827_v34 }
  0x32   :  { %760 = vmatprep.subr.bf16.mxu0 %v830_v41 }
  0x33   :  { %753 = vmatpush3.bf16.msra.mxu1 %v829_v40 }
  0x34   :  { %784 = vmatprep.subr.bf16.mxu1 %v900_v44  ;;  %522 = vmatmul.mubr.bf16.vlgmr.msra.gmra.mrb[0].mxu0 %v160_v46 }
  0x35   :  { %761 = vmatpush3.bf16.msra.mxu0 %v831_v49  ;;  %601 = vmatprep.mubr.bf16.mxu0 %v181_v54 }
  0x36   :  { %562 = vmatmul.mubr.bf16.vlgmr.msra.gmra.mrb[0].mxu1 %v182_v51  ;;  %762 = vmatprep.subr.bf16.mxu0 %v832_v52 }
  0x37   :  { %786 = vmatprep.mubr.msk.bf16.mxu1 %vm901_vm0, %v900_v44  ;;  %785 = vmatpush3.bf16.msra.mxu1 %v846_v60 }
  0x39   :  { %763 = vmatpush3.bf16.msra.mxu0 %v833_v55 }
  0x3a   :  { %764 = vmatprep.subr.bf16.mxu0 %v834_v56 }
  0x3d   :  { %765 = vmatpush3.bf16.msra.mxu0 %v835_v57 }
  0x3e   :  { %766 = vmatprep.subr.bf16.mxu0 %v836_v59  ;;  %787 = vmatmul.mubr.msk.bf16.vlgmr.msra.gmra.mrb[4].mxu1 %vm485_vm1, %v183_v62 }
  0x41   :  { %767 = vmatpush3.bf16.msra.mxu0 %v837_v61 }
  0x42   :  { %768 = vmatprep.subr.bf16.mxu0 %v838_v63 }
  0x45   :  { %769 = vmatpush3.bf16.msra.mxu0 %v839_v0 }
  0x46   :  { %770 = vmatprep.subr.bf16.mxu0 %v840_v1 }
  0x49   :  { %771 = vmatpush3.bf16.msra.mxu0 %v841_v2 }
  0x4a   :  { %772 = vmatprep.subr.bf16.mxu0 %v842_v3 }
  0x4d   :  { %773 = vmatpush3.bf16.msra.mxu0 %v843_v4 }
  0x4e   :  { %774 = vmatprep.subr.bf16.mxu0 %v844_v5 }
  0x51   :  { %775 = vmatpush3.bf16.msra.mxu0 %v845_v6 }
  0x54   :  { %602 = vmatmul.mubr.bf16.vlgmr.msra.gmra.mrb[4].mxu0 %v167_v58 }
 0x107   :  { %v732_v10 = vpop.f32.mrb[0].mxu0 }
 0x108   :  { %v733_v12 = vpop.f32.mrb[1].mxu0 }
 0x109   :  { %v734_v13 = vadd.f32 %v733_v12, %v732_v10  ;;  %v735_v14 = vpop.f32.mrb[2].mxu0  ;;  %v754_v15 = vpop.f32.mrb[0].mxu1 }
 0x10a   :  { %v736_v16 = vpop.f32.mrb[3].mxu0  ;;  %v755_v17 = vpop.f32.mrb[1].mxu1 }
 0x10b   :  { %v524_v18 = vadd.f32 %v734_v13, %v135_v11  ;;  %v756_v19 = vadd.f32 %v755_v17, %v754_v15  ;;  %v757_v20 = vpop.f32.mrb[2].mxu1 }
 0x10c   :  { %v758_v21 = vpop.f32.mrb[3].mxu1 }
 0x10d   :  { %v564_v22 = vadd.f32 %v756_v19, %v524_v18 }
 0x111   :  { %v643_v23 = vpop.f32.mrb[4].mxu1 }
 0x112   :  { %v788_v24 = vpop.f32.mrb[5].mxu1 }
 0x113   :  { %v646_v25 = vpop.f32.mrb[6].mxu1 }
 0x114   :  { %v789_v26 = vpop.f32.mrb[7].mxu1 }
 0x127   :  { %v776_v27 = vpop.f32.mrb[4].mxu0 }
 0x128   :  { %v777_v28 = vpop.f32.mrb[5].mxu0 }
 0x129   :  { %v778_v29 = vadd.f32 %v777_v28, %v776_v27  ;;  %v779_v30 = vpop.f32.mrb[6].mxu0 }
 0x12a   :  { %v780_v31 = vpop.f32.mrb[7].mxu0 }
 0x12b   :  { %v604_v32 = vadd.f32 %v778_v29, %v564_v22 }
 0x12d   :  { %v644_v33 = vadd.f32 %v643_v23, %v604_v32 }
 0x12f   :  { %650 = vst.msk [vmem:[#allocation5] sm:$0x3] %vm649_vm2, %v644_v33 }
 0x130   :  { %880 = shalt.err (!%p877_p12)
}
 0x131   :  { %s881_s5 = scalar_lea.hbm %s960_s3, 32 }
 0x132   :  { %p882_p13 = scmp.ne.s32.totalorder %s960_s3, %s881_s5  ;;  %p885_p0 = scmp.lt.u32.totalorder %s881_s5, %s960_s3 }
 0x134   :  { %p887_p1 = pnand %p885_p0, %p882_p13 }
 0x136   :  { %890 = shalt.err (!%p887_p1)
}
 0x137   :  { %660 = dma.vmem_to_hbm [thread:$0]  %s658_s28, 32, %s960_s3, [#allocation4]  }
 0x138   :  { %893 = dma.done.wait [#allocation4], 32  }
 0x139   :  { %894 = vsyncadd [#allocation4], 4294967264 }
 0x13a   :  { %664 = vsyncpa [#allocation3], 1 }
 0x13b   :  { %665 = vsyncpa [#allocation4], 1 }

</bundles_post_ra>
